<compile_context>
chip_gen: v5e
topology: v5e:2x2
jax: 0.10.0
libtpu: 0.0.40
codegen_flags: <defaults>
</compile_context>

<pallas_src>
import jax
import jax.numpy as jnp
from jax.experimental import pallas as pl
from jax.experimental.pallas import tpu as pltpu

B = 2          # batch
SEQ = 8        # sequence length
D_MODEL = 32   # d_model
D_FF = 64      # d_ff


# ---------------- Pallas kernel ----------------
def ffn_kernel(x_ref, p1_ref, p2_ref, o_ref):
    # x_ref : (B*SEQ, D_MODEL) f32
    # p1_ref: (D_MODEL + 1, D_FF)    f32  -> rows [0:D_MODEL] = W1, row D_MODEL = b1
    # p2_ref: (D_FF + 1,   D_MODEL)  f32  -> rows [0:D_FF]    = W2, row D_FF    = b2
    x = x_ref[...]

    # Linear 1 (f32 operands, f32 MXU accumulation) + bias + ReLU.
    w1 = p1_ref[0:D_MODEL, :]            # static, sublane-aligned view (offset 0)
    b1 = p1_ref[D_MODEL:D_MODEL + 1, :]  # static view at sublane-aligned offset 32
    h = jnp.dot(x, w1, preferred_element_type=jnp.float32) + b1
    h = jnp.maximum(h, 0.0)

    # Dropout: inference mode (identity).
    # TODO(synk): training-mode dropout (Bernoulli mask + 1/(1-p) scale via
    # pltpu.prng_seed / pltpu.prng_random_bits) not implemented.

    # Linear 2 (f32 operands, f32 MXU accumulation) + bias.
    w2 = p2_ref[0:D_FF, :]               # offset 0
    b2 = p2_ref[D_FF:D_FF + 1, :]        # sublane-aligned offset 64
    o_ref[...] = jnp.dot(h, w2, preferred_element_type=jnp.float32) + b2


# ---------------- parameter packing (done ONCE, not per forward call) ----------------
def pack_ffn_params(w1, b1, w2, b2):
    """w1: (D_MODEL, D_FF), b1: (1, D_FF), w2: (D_FF, D_MODEL), b2: (1, D_MODEL).

    Weights stored (in, out) so the kernel computes x @ W + b (== torch's x @ weight.T + bias).
    Bias is appended as the final row so each Linear ships as a single slab/DMA."""
    p1 = jnp.concatenate([w1, b1], axis=0)  # (D_MODEL + 1, D_FF)
    p2 = jnp.concatenate([w2, b2], axis=0)  # (D_FF + 1, D_MODEL)
    return p1, p2


# ---------------- wrapper ----------------
def feed_forward_block(x, p1, p2):
    """x: (B, S, D_MODEL) f32; p1/p2: pre-packed parameter slabs (see pack_ffn_params)."""
    b, s, d = x.shape
    x2 = x.reshape(b * s, d)  # collapse batch+seq: one kernel invocation, no grid

    vmem = lambda: pl.BlockSpec(memory_space=pltpu.MemorySpace.VMEM)
    out = pl.pallas_call(
        ffn_kernel,
        out_shape=jax.ShapeDtypeStruct((b * s, d), jnp.float32),
        in_specs=[vmem(), vmem(), vmem()],
        out_specs=vmem(),
    )(x2, p1, p2)
    return out.reshape(b, s, d)


# ---------------- pure-JAX f32 reference (same math as the PyTorch module) ----------------
def reference(x, w1, b1, w2, b2):
    h = jnp.maximum(x @ w1 + b1, 0.0)
    return h @ w2 + b2


# ---------------- driver ----------------
if __name__ == "__main__":
    key = jax.random.PRNGKey(0)
    k0, k1, k2, k3, k4 = jax.random.split(key, 5)

    scale = 0.05
    x = jax.random.normal(k0, (B, SEQ, D_MODEL), jnp.float32)
    w1 = scale * jax.random.normal(k1, (D_MODEL, D_FF), jnp.float32)
    b1 = scale * jax.random.normal(k2, (1, D_FF), jnp.float32)
    w2 = scale * jax.random.normal(k3, (D_FF, D_MODEL), jnp.float32)
    b2 = scale * jax.random.normal(k4, (1, D_MODEL), jnp.float32)

    # Pack parameters once (parameter-init time), not per forward call.
    p1, p2 = pack_ffn_params(w1, b1, w2, b2)

    out = jax.block_until_ready(feed_forward_block(x, p1, p2))
    ref = jax.block_until_ready(reference(x, w1, b1, w2, b2))

    assert out.shape == (B, SEQ, D_MODEL)
    # f32 operands end-to-end: typically exact to ~1e-6; tolerance only covers a possible
    # reduced-precision MXU pass decomposition for f32 matmul operands.
    err = float(jnp.max(jnp.abs(out - ref)))
    assert jnp.allclose(out, ref, rtol=5e-3, atol=5e-3), err
    print("KERNEL_OK")
</pallas_src>

<mosaic_0001>
module attributes {stable_mosaic.version = 11 : i64} {
  func.func @ffn_kernel(%arg0: memref<16x32xf32, #tpu.memory_space<vmem>>, %arg1: memref<33x64xf32, #tpu.memory_space<vmem>>, %arg2: memref<65x32xf32, #tpu.memory_space<vmem>>, %arg3: memref<16x32xf32, #tpu.memory_space<vmem>>) attributes {dimension_semantics = [], scalar_prefetch = 0 : i64, scratch_operands = 0 : i64, tpu.core_type = #tpu.core_type<tc>} {
    %c0 = arith.constant 0 : index
    %c0_0 = arith.constant 0 : index
    %0 = vector.load %arg0[%c0, %c0_0] : memref<16x32xf32, #tpu.memory_space<vmem>>, vector<16x32xf32>
    %c0_1 = arith.constant 0 : index
    %c0_2 = arith.constant 0 : index
    %1 = vector.load %arg1[%c0_1, %c0_2] : memref<33x64xf32, #tpu.memory_space<vmem>>, vector<32x64xf32>
    %c32 = arith.constant 32 : index
    %c0_3 = arith.constant 0 : index
    %2 = vector.load %arg1[%c32, %c0_3] : memref<33x64xf32, #tpu.memory_space<vmem>>, vector<1x64xf32>
    %cst = arith.constant dense<0.000000e+00> : vector<16x64xf32>
    %3 = tpu.matmul %0, %1, %cst {dimension_numbers = #tpu.dot_dimension_numbers<[1], [0], [0], [1], [0, 0, 1, 1], [], []>} : vector<16x32xf32>, vector<32x64xf32>, vector<16x64xf32> -> vector<16x64xf32>
    %4 = vector.broadcast %2 : vector<1x64xf32> to vector<16x64xf32>
    %5 = arith.addf %3, %4 : vector<16x64xf32>
    %cst_4 = arith.constant 0.000000e+00 : f32
    %6 = vector.broadcast %cst_4 : f32 to vector<16x64xf32>
    %7 = arith.maximumf %5, %6 : vector<16x64xf32>
    %c0_5 = arith.constant 0 : index
    %c0_6 = arith.constant 0 : index
    %8 = vector.load %arg2[%c0_5, %c0_6] : memref<65x32xf32, #tpu.memory_space<vmem>>, vector<64x32xf32>
    %c64 = arith.constant 64 : index
    %c0_7 = arith.constant 0 : index
    %9 = vector.load %arg2[%c64, %c0_7] : memref<65x32xf32, #tpu.memory_space<vmem>>, vector<1x32xf32>
    %cst_8 = arith.constant dense<0.000000e+00> : vector<16x32xf32>
    %10 = tpu.matmul %7, %8, %cst_8 {dimension_numbers = #tpu.dot_dimension_numbers<[1], [0], [0], [1], [0, 0, 1, 1], [], []>} : vector<16x64xf32>, vector<64x32xf32>, vector<16x32xf32> -> vector<16x32xf32>
    %11 = vector.broadcast %9 : vector<1x32xf32> to vector<16x32xf32>
    %12 = arith.addf %10, %11 : vector<16x32xf32>
    %c0_9 = arith.constant 0 : index
    %c0_10 = arith.constant 0 : index
    %13 = vector.load %arg3[%c0_9, %c0_10] : memref<16x32xf32, #tpu.memory_space<vmem>>, vector<16x32xf32>
    tpu.vector_store %arg3[%c0_9, %c0_10], %12 {strides = array<i32>} : memref<16x32xf32, #tpu.memory_space<vmem>>, vector<16x32xf32>,
    return
  }
}

</mosaic_0001>

<bundles_post_ra>
// kernel: tpu_custom_call.1
= control target key start
LH: loop header
LB: loop body
LE: loop exit
PB: predicated region body
PF: predicated region fallthrough
CT: control target
= control target key end

     0   :  { %s240_s0 = inlined_call_operand.vmem [shape: f32[16,32], index: 0, kind: input, shape index: {}]   ;;  %s241_s1 = inlined_call_operand.vmem [shape: f32[33,64], index: 1, kind: input, shape index: {}]   ;;  %s242_s2 = inlined_call_operand.vmem [shape: f32[65,32], index: 2, kind: input, shape index: {}]   ;;  %s243_s3 = inlined_call_operand.hbm [shape: f32[16,32], index: 3, kind: output, shape index: {}]  }
   0x1   :  { %v20_v0 = vld [vmem:[%s241_s1 + $0x18] sm:$0xff]  ;;  %v19_v1 = vld [vmem:[%s241_s1 + $0x10] sm:$0xff]  ;;  %v18_v2 = vld [vmem:[%s241_s1 + $0x8] sm:$0xff] }
   0x2   :  { %119 = vmatpush.msra.mxu3 %v20_v0  ;;  %42 = vmatpush.msra.mxu0 %v20_v0  ;;  %v62_v3 = vld [vmem:[%s242_s2 + $0x38] sm:$0xff]  ;;  %v61_v4 = vld [vmem:[%s242_s2 + $0x30] sm:$0xff]  ;;  %v17_v5 = vld [vmem:[%s241_s1] sm:$0xff] }
   0x3   :  { %123 = vmatpush.msra.mxu2 %v62_v3  ;;  %80 = vmatpush.msra.mxu1 %v62_v3 }
   0x4   :  { %120 = vmatpush.msra.mxu3 %v19_v1  ;;  %43 = vmatpush.msra.mxu0 %v19_v1 }
   0x5   :  { %8 = vsyncpa [#allocation3], 0  ;;  %v16_v6 = vld [vmem:[%s240_s0 + $0x8] sm:$0xff]  ;;  %vm23_vm0 = vcmask 261120   ;;  %v15_v7 = vld [vmem:[%s240_s0] sm:$0xff]  ;;  %124 = vmatpush.msra.mxu2 %v61_v4  ;;  %81 = vmatpush.msra.mxu1 %v61_v4  ;;  %vm65_vm1 = vcmask 523264  }
   0x6   :  { %121 = vmatpush.msra.mxu3 %v18_v2  ;;  %44 = vmatpush.msra.mxu0 %v18_v2  ;;  %v60_v8 = vld [vmem:[%s242_s2 + $0x28] sm:$0xff]  ;;  %v59_v9 = vld [vmem:[%s242_s2 + $0x20] sm:$0xff]  ;;  %v58_v10 = vld [vmem:[%s242_s2 + $0x18] sm:$0xff]  ;;  %s162_s16 = smov [#allocation2]   ;;  %s103_s19 = sshll.u32 %s243_s3, 4  ;;  %s104_s19 = int_to_ptr.hbm [resolvable:$true] %s103_s19 }
   0x7   :  { %125 = vmatpush.msra.mxu2 %v60_v8  ;;  %82 = vmatpush.msra.mxu1 %v60_v8  ;;  %v57_v11 = vld [vmem:[%s242_s2 + $0x10] sm:$0xff]  ;;  %v56_v12 = vld [vmem:[%s242_s2 + $0x8] sm:$0xff]  ;;  %v55_v13 = vld [vmem:[%s242_s2] sm:$0xff]  ;;  %s101_s17 = sshll.u32 %s162_s16, 4  ;;  %s163_s20 = smov 128   ;;  %s102_s17 = int_to_ptr.vmem [resolvable:$true] %s101_s17 }
   0x8   :  { %122 = vmatpush.msra.mxu3 %v17_v5  ;;  %45 = vmatpush.msra.mxu0 %v17_v5  ;;  %v134_v14 = vld [vmem:[%s241_s1 + $0x20] ss:$0 sm:$0xff]  ;;  %s164_s21 = smov 8  }
   0x9   :  { %116 = vmatmul.msk.f32.vlgmr.msra.gmra.mxu3 %vm23_vm0, %v16_v6  ;;  %115 = vmatmul.msk.f32.vlgmr.msra.gmra.mxu0 %vm23_vm0, %v15_v7  ;;  %v135_v21 = vld [vmem:[%s242_s2 + $0x40] ss:$0 sm:$0xff] }
   0xa   :  { %126 = vmatpush.msra.mxu2 %v59_v9  ;;  %83 = vmatpush.msra.mxu1 %v59_v9 }
   0xc   :  { %127 = vmatpush.msra.mxu2 %v58_v10  ;;  %84 = vmatpush.msra.mxu1 %v58_v10 }
   0xe   :  { %128 = vmatpush.msra.mxu2 %v57_v11  ;;  %85 = vmatpush.msra.mxu1 %v57_v11 }
  0x10   :  { %129 = vmatpush.msra.mxu2 %v56_v12  ;;  %86 = vmatpush.msra.mxu1 %v56_v12 }
  0x12   :  { %130 = vmatpush.msra.mxu2 %v55_v13  ;;  %87 = vmatpush.msra.mxu1 %v55_v13 }
  0x86   :  { %v47_v15 = vpop.f32.mrf.mxu0 }
  0x87   :  { %v48_v16 = vadd.f32 %v134_v14, %v47_v15 }
  0x89   :  { %v53_v17 = vmax.f32 %v48_v16, 0.0 }
  0x8b   :  { %117 = vmatmul.msk.f32.vlgmr.msra.gmra.mxu1 %vm65_vm1, %v53_v17 }
  0x8c   :  { %v50_v18 = vpop.f32.mrf.mxu3 }
  0x8d   :  { %v51_v19 = vadd.f32 %v134_v14, %v50_v18 }
  0x8f   :  { %v54_v20 = vmax.f32 %v51_v19, 0.0 }
  0x91   :  { %118 = vmatmul.msk.f32.vlgmr.msra.gmra.mxu2 %vm65_vm1, %v54_v20 }
 0x108   :  { %v89_v22 = vpop.f32.mrf.mxu1 }
 0x109   :  { %v90_v23 = vadd.f32 %v135_v21, %v89_v22 }
 0x10b   :  { %95 = vst.msk [vmem:[#allocation2] sm:$0xff] %vm23_vm0, %v90_v23 }
 0x114   :  { %v92_v24 = vpop.f32.mrf.mxu2 }
 0x115   :  { %v93_v25 = vadd.f32 %v135_v21, %v92_v24 }
 0x117   :  { %96 = vst.msk [vmem:[#allocation2 + $0x8] sm:$0xff] %vm23_vm0, %v93_v25 }
 0x118   :  { %109 = dma.vmem_to_hbm [thread:$0]  %s102_s17, 256, %s104_s19, [#allocation3], %s163_s20, %s163_s20, %s164_s21  }
 0x119   :  { %160 = dma.done.wait [#allocation3], 256  }
 0x11a   :  { %161 = vsyncadd [#allocation3], 4294967040 }
 0x11b   :  { %114 = vsyncpa [#allocation3], 1 }

</bundles_post_ra>
